<compile_context>
chip_gen: v7x
topology: tpu7x:2x2x1
jax: 0.10.0
libtpu: 0.0.40
codegen_flags: <defaults>
</compile_context>

<pallas_src>
import functools
import math

import jax
import jax.numpy as jnp
from jax import lax
from jax.experimental import pallas as pl
from jax.experimental.pallas import tpu as pltpu


# ---------------------------------------------------------------------------
# Scaled dot-product attention (flash-style, multi-head inside the kernel)
# ---------------------------------------------------------------------------
def _flash_sdpa_kernel(q_ref, k_ref, v_ref, o_ref, m_sc, l_sc, acc_sc,
                       *, num_heads, scale):
    ki = pl.program_id(2)

    @pl.when(ki == 0)
    def _init():
        m_sc[...] = jnp.full_like(m_sc, -jnp.inf)
        l_sc[...] = jnp.zeros_like(l_sc)
        acc_sc[...] = jnp.zeros_like(acc_sc)

    q = q_ref[0]                     # (tq, D) in input dtype
    k = k_ref[0]                     # (tk, D)
    v = v_ref[0]                     # (tk, D)
    d = q.shape[-1]
    dh = d // num_heads

    for h in range(num_heads):       # static unrolled loop over heads
        qh = q[:, h * dh:(h + 1) * dh] * scale          # fold 1/sqrt(d_k) into q
        kh = k[:, h * dh:(h + 1) * dh]
        vh = v[:, h * dh:(h + 1) * dh]

        # (tq, dh) x (tk, dh) contracting the last axes -> (tq, tk); no .T
        s = lax.dot_general(qh, kh, (((1,), (1,)), ((), ())),
                            preferred_element_type=jnp.float32)

        m_prev = m_sc[h]                                 # (tq, 1) f32
        m_new = jnp.maximum(m_prev, jnp.max(s, axis=-1, keepdims=True))
        alpha = jnp.exp(m_prev - m_new)
        p = jnp.exp(s - m_new)                           # f32 probs

        l_sc[h] = alpha * l_sc[h] + jnp.sum(p, axis=-1, keepdims=True)
        acc_sc[h] = alpha * acc_sc[h] + jnp.dot(
            p.astype(vh.dtype), vh, preferred_element_type=jnp.float32)
        m_sc[h] = m_new

    @pl.when(ki == pl.num_programs(2) - 1)
    def _finalize():
        outs = []
        for h in range(num_heads):
            inv_l = pl.reciprocal(l_sc[h], approx=False)  # (tq, 1)
            outs.append(acc_sc[h] * inv_l)
        # single lane-dense (tq, D) store
        o_ref[0] = jnp.concatenate(outs, axis=-1).astype(o_ref.dtype)


# ---------------------------------------------------------------------------
# Linear scaled dot-product attention (per-head score matrix is only dh x dh,
# so full-sequence blocks are cheap; no S x S matrix exists in this variant)
# ---------------------------------------------------------------------------
def _linear_sdpa_kernel(q_ref, k_ref, v_ref, o_ref, *, num_heads):
    q = q_ref[0]                     # (S, D)
    k = k_ref[0]
    v = v_ref[0]
    d = q.shape[-1]
    dh = d // num_heads

    outs = []
    for h in range(num_heads):
        qh = q[:, h * dh:(h + 1) * dh].astype(jnp.float32)
        kh = k[:, h * dh:(h + 1) * dh].astype(jnp.float32)
        vh = v[:, h * dh:(h + 1) * dh]

        # softmax over the sequence axis of keys
        kh = kh - jnp.max(kh, axis=0, keepdims=True)
        ke = jnp.exp(kh)
        kw = ke / jnp.sum(ke, axis=0, keepdims=True)      # (S, dh)

        # kw^T @ v without an explicit transpose: contract axis 0 of both
        w = lax.dot_general(kw.astype(vh.dtype), vh, (((0,), (0,)), ((), ())),
                            preferred_element_type=jnp.float32)  # (dh, dh)

        # softmax over the feature axis of queries
        qh = qh - jnp.max(qh, axis=-1, keepdims=True)
        qe = jnp.exp(qh)
        qw = qe / jnp.sum(qe, axis=-1, keepdims=True)     # (S, dh)

        outs.append(jnp.dot(qw.astype(w.dtype), w,
                            preferred_element_type=jnp.float32))
    o_ref[0] = jnp.concatenate(outs, axis=-1).astype(o_ref.dtype)


# ---------------------------------------------------------------------------
# Wrapper
# ---------------------------------------------------------------------------
def _pick_seq_tile(s, cap=256):
    """Largest tile <= cap that divides S (and is a multiple of 8), else S."""
    if s <= cap:
        return s
    for t in (256, 128, 64, 32, 16, 8):
        if t <= cap and s % t == 0:
            return t
    # TODO(synk): ragged sequence lengths would need key-side masking; fall
    # back to whole-sequence blocks (correct, just not tiled).
    return s


def multi_head_attention(queries, keys, values, num_heads,
                         linear_attention=False):
    """Equivalent of MultiHeadAttentionBase(num_heads, linear_attention).forward."""
    B, S, D = queries.shape
    assert D % num_heads == 0, "hidden dim must be divisible by num_heads"
    dh = D // num_heads

    vmem_limit = 48 * 1024 * 1024  # safe on v5e/v6e (128 MiB) and v7x (64 MiB)

    if linear_attention:
        kernel = functools.partial(_linear_sdpa_kernel, num_heads=num_heads)
        return pl.pallas_call(
            kernel,
            out_shape=jax.ShapeDtypeStruct((B, S, D), queries.dtype),
            grid_spec=pltpu.PrefetchScalarGridSpec(
                num_scalar_prefetch=0,
                grid=(B,),
                in_specs=[pl.BlockSpec((1, S, D), lambda b: (b, 0, 0))] * 3,
                out_specs=pl.BlockSpec((1, S, D), lambda b: (b, 0, 0)),
            ),
            compiler_params=pltpu.CompilerParams(
                dimension_semantics=("parallel",),
                vmem_limit_bytes=vmem_limit),
        )(queries, keys, values)

    # flash-tiled scaled dot-product attention
    tq = _pick_seq_tile(S)
    tk = _pick_seq_tile(S)
    n_q = S // tq if S % tq == 0 else 1
    n_kv = S // tk if S % tk == 0 else 1
    scale = 1.0 / math.sqrt(dh)

    kernel = functools.partial(_flash_sdpa_kernel,
                               num_heads=num_heads, scale=scale)
    return pl.pallas_call(
        kernel,
        out_shape=jax.ShapeDtypeStruct((B, S, D), queries.dtype),
        grid_spec=pltpu.PrefetchScalarGridSpec(
            num_scalar_prefetch=0,
            grid=(B, n_q, n_kv),
            in_specs=[
                pl.BlockSpec((1, tq, D), lambda b, qi, ki: (b, qi, 0)),
                pl.BlockSpec((1, tk, D), lambda b, qi, ki: (b, ki, 0)),
                pl.BlockSpec((1, tk, D), lambda b, qi, ki: (b, ki, 0)),
            ],
            out_specs=pl.BlockSpec((1, tq, D), lambda b, qi, ki: (b, qi, 0)),
            scratch_shapes=[
                pltpu.VMEM((num_heads, tq, 1), jnp.float32),   # running max
                pltpu.VMEM((num_heads, tq, 1), jnp.float32),   # running sum
                pltpu.VMEM((num_heads, tq, dh), jnp.float32),  # accumulator
            ],
        ),
        compiler_params=pltpu.CompilerParams(
            dimension_semantics=("parallel", "parallel", "arbitrary"),
            vmem_limit_bytes=vmem_limit),
    )(queries, keys, values)


# ---------------------------------------------------------------------------
# Pure-JAX references (match the PyTorch module)
# ---------------------------------------------------------------------------
def _split_heads(x, num_heads):
    B, S, D = x.shape
    dh = D // num_heads
    return x.reshape(B, S, num_heads, dh).transpose(0, 2, 1, 3)


def _ref_sdpa(q, k, v, num_heads):
    B, S, D = q.shape
    dh = D // num_heads
    qh, kh, vh = (_split_heads(t, num_heads) for t in (q, k, v))
    s = jnp.einsum("bhqd,bhkd->bhqk", qh, kh) / math.sqrt(dh)
    p = jax.nn.softmax(s, axis=-1)
    o = jnp.einsum("bhqk,bhkd->bhqd", p, vh)
    return o.transpose(0, 2, 1, 3).reshape(B, S, D)


def _ref_linear(q, k, v, num_heads):
    B, S, D = q.shape
    qh, kh, vh = (_split_heads(t, num_heads) for t in (q, k, v))
    kw = jax.nn.softmax(kh, axis=-2)                      # over sequence
    w = jnp.einsum("bhsd,bhse->bhde", kw, vh)             # (dh, dh)
    qw = jax.nn.softmax(qh, axis=-1)                      # over features
    o = jnp.einsum("bhsd,bhde->bhse", qw, w)
    return o.transpose(0, 2, 1, 3).reshape(B, S, D)


if __name__ == "__main__":
    key = jax.random.PRNGKey(0)

    # --- small shapes consistent with the module's (batch, seq, hidden) inputs
    B, S, D, H = 2, 8, 32, 4
    kq, kk, kv = jax.random.split(key, 3)
    q = jax.random.normal(kq, (B, S, D), dtype=jnp.float32)
    k = jax.random.normal(kk, (B, S, D), dtype=jnp.float32)
    v = jax.random.normal(kv, (B, S, D), dtype=jnp.float32)

    out = jax.block_until_ready(
        multi_head_attention(q, k, v, num_heads=H, linear_attention=False))
    ref = _ref_sdpa(q, k, v, H)
    assert out.shape == (B, S, D)
    assert jnp.allclose(out, ref, atol=1e-4, rtol=1e-4), "sdpa mismatch"

    out_lin = jax.block_until_ready(
        multi_head_attention(q, k, v, num_heads=H, linear_attention=True))
    ref_lin = _ref_linear(q, k, v, H)
    assert jnp.allclose(out_lin, ref_lin, atol=1e-4, rtol=1e-4), "linear mismatch"

    # --- a second config that exercises the flash tiling (multiple q/kv tiles)
    B2, S2, D2, H2 = 2, 512, 64, 2
    kq2, kk2, kv2 = jax.random.split(jax.random.PRNGKey(1), 3)
    q2 = jax.random.normal(kq2, (B2, S2, D2), dtype=jnp.float32)
    k2 = jax.random.normal(kk2, (B2, S2, D2), dtype=jnp.float32)
    v2 = jax.random.normal(kv2, (B2, S2, D2), dtype=jnp.float32)

    out2 = jax.block_until_ready(
        multi_head_attention(q2, k2, v2, num_heads=H2, linear_attention=False))
    ref2 = _ref_sdpa(q2, k2, v2, H2)
    assert jnp.allclose(out2, ref2, atol=1e-4, rtol=1e-4), "tiled sdpa mismatch"

    print("KERNEL_OK")
</pallas_src>

<mosaic_0001>
module attributes {stable_mosaic.version = 11 : i64} {
  func.func @_flash_sdpa_kernel(%arg0: i32, %arg1: i32, %arg2: i32, %arg3: memref<1x8x32xf32, #tpu.memory_space<vmem>>, %arg4: memref<1x8x32xf32, #tpu.memory_space<vmem>>, %arg5: memref<1x8x32xf32, #tpu.memory_space<vmem>>, %arg6: memref<1x8x32xf32, #tpu.memory_space<vmem>>, %arg7: memref<4x8x1xf32, #tpu.memory_space<vmem>>, %arg8: memref<4x8x1xf32, #tpu.memory_space<vmem>>, %arg9: memref<4x8x8xf32, #tpu.memory_space<vmem>>) attributes {dimension_semantics = [#tpu.dimension_semantics<parallel>, #tpu.dimension_semantics<parallel>, #tpu.dimension_semantics<arbitrary>], iteration_bounds = array<i64: 2, 1, 1>, scalar_prefetch = 0 : i64, scratch_operands = 3 : i64, tpu.core_type = #tpu.core_type<tc>, window_params = [{transform_indices = @transform_0, window_bounds = array<i64: 1, 8, 32>}, {transform_indices = @transform_1, window_bounds = array<i64: 1, 8, 32>}, {transform_indices = @transform_2, window_bounds = array<i64: 1, 8, 32>}, {transform_indices = @transform_3, window_bounds = array<i64: 1, 8, 32>}]} {
    %c0_i32 = arith.constant 0 : i32
    %0 = arith.cmpi eq, %arg2, %c0_i32 : i32
    %1 = arith.extui %0 : i1 to i32
    %c0_i32_0 = arith.constant 0 : i32
    %2 = arith.cmpi ne, %1, %c0_i32_0 : i32
    scf.if %2 {
      %cst_99 = arith.constant 0xFF800000 : f32
      %160 = vector.broadcast %cst_99 : f32 to vector<4x8x1xf32>
      %c0_100 = arith.constant 0 : index
      %c0_101 = arith.constant 0 : index
      %c0_102 = arith.constant 0 : index
      %161 = vector.load %arg7[%c0_100, %c0_101, %c0_102] : memref<4x8x1xf32, #tpu.memory_space<vmem>>, vector<4x8x1xf32>
      tpu.vector_store %arg7[%c0_100, %c0_101, %c0_102], %160 {strides = array<i32>} : memref<4x8x1xf32, #tpu.memory_space<vmem>>, vector<4x8x1xf32>,
      %cst_103 = arith.constant 0.000000e+00 : f32
      %162 = vector.broadcast %cst_103 : f32 to vector<4x8x1xf32>
      %c0_104 = arith.constant 0 : index
      %c0_105 = arith.constant 0 : index
      %c0_106 = arith.constant 0 : index
      %163 = vector.load %arg8[%c0_104, %c0_105, %c0_106] : memref<4x8x1xf32, #tpu.memory_space<vmem>>, vector<4x8x1xf32>
      tpu.vector_store %arg8[%c0_104, %c0_105, %c0_106], %162 {strides = array<i32>} : memref<4x8x1xf32, #tpu.memory_space<vmem>>, vector<4x8x1xf32>,
      %cst_107 = arith.constant 0.000000e+00 : f32
      %164 = vector.broadcast %cst_107 : f32 to vector<4x8x8xf32>
      %c0_108 = arith.constant 0 : index
      %c0_109 = arith.constant 0 : index
      %c0_110 = arith.constant 0 : index
      %165 = vector.load %arg9[%c0_108, %c0_109, %c0_110] : memref<4x8x8xf32, #tpu.memory_space<vmem>>, vector<4x8x8xf32>
      tpu.vector_store %arg9[%c0_108, %c0_109, %c0_110], %164 {strides = array<i32>} : memref<4x8x8xf32, #tpu.memory_space<vmem>>, vector<4x8x8xf32>,
    } else {
    }
    %c0 = arith.constant 0 : index
    %c0_1 = arith.constant 0 : index
    %c0_2 = arith.constant 0 : index
    %3 = vector.load %arg3[%c0, %c0_1, %c0_2] : memref<1x8x32xf32, #tpu.memory_space<vmem>>, vector<1x8x32xf32>
    %4 = vector.shape_cast %3 : vector<1x8x32xf32> to vector<8x32xf32>
    %c0_3 = arith.constant 0 : index
    %c0_4 = arith.constant 0 : index
    %c0_5 = arith.constant 0 : index
    %5 = vector.load %arg4[%c0_3, %c0_4, %c0_5] : memref<1x8x32xf32, #tpu.memory_space<vmem>>, vector<1x8x32xf32>
    %6 = vector.shape_cast %5 : vector<1x8x32xf32> to vector<8x32xf32>
    %c0_6 = arith.constant 0 : index
    %c0_7 = arith.constant 0 : index
    %c0_8 = arith.constant 0 : index
    %7 = vector.load %arg5[%c0_6, %c0_7, %c0_8] : memref<1x8x32xf32, #tpu.memory_space<vmem>>, vector<1x8x32xf32>
    %8 = vector.shape_cast %7 : vector<1x8x32xf32> to vector<8x32xf32>
    %9 = vector.extract_strided_slice %4 {offsets = [0, 0], sizes = [8, 8], strides = [1, 1]} : vector<8x32xf32> to vector<8x8xf32>
    %cst = arith.constant 0.353553385 : f32
    %10 = vector.broadcast %cst : f32 to vector<8x8xf32>
    %11 = arith.mulf %9, %10 : vector<8x8xf32>
    %12 = vector.extract_strided_slice %6 {offsets = [0, 0], sizes = [8, 8], strides = [1, 1]} : vector<8x32xf32> to vector<8x8xf32>
    %13 = vector.extract_strided_slice %8 {offsets = [0, 0], sizes = [8, 8], strides = [1, 1]} : vector<8x32xf32> to vector<8x8xf32>
    %cst_9 = arith.constant dense<0.000000e+00> : vector<8x8xf32>
    %14 = tpu.matmul %11, %12, %cst_9 {dimension_numbers = #tpu.dot_dimension_numbers<[1], [1], [0], [0], [0, 0, 1, 0], [], []>} : vector<8x8xf32>, vector<8x8xf32>, vector<8x8xf32> -> vector<8x8xf32>
    %c0_10 = arith.constant 0 : index
    %c0_11 = arith.constant 0 : index
    %c0_12 = arith.constant 0 : index
    %15 = vector.load %arg7[%c0_10, %c0_11, %c0_12] : memref<4x8x1xf32, #tpu.memory_space<vmem>>, vector<1x8x1xf32>
    %16 = vector.shape_cast %15 : vector<1x8x1xf32> to vector<8x1xf32>
    %cst_13 = arith.constant dense<0xFF800000> : vector<8xf32>
    %17 = vector.multi_reduction <maximumf>, %14, %cst_13 [1] : vector<8x8xf32> to vector<8xf32>
    %18 = vector.shape_cast %17 : vector<8xf32> to vector<8x1xf32>
    %19 = arith.maximumf %16, %18 : vector<8x1xf32>
    %20 = arith.subf %16, %19 : vector<8x1xf32>
    %21 = math.exp %20 : vector<8x1xf32>
    %22 = vector.broadcast %19 : vector<8x1xf32> to vector<8x8xf32>
    %23 = arith.subf %14, %22 : vector<8x8xf32>
    %24 = math.exp %23 : vector<8x8xf32>
    %c0_14 = arith.constant 0 : index
    %c0_15 = arith.constant 0 : index
    %c0_16 = arith.constant 0 : index
    %25 = vector.load %arg8[%c0_14, %c0_15, %c0_16] : memref<4x8x1xf32, #tpu.memory_space<vmem>>, vector<1x8x1xf32>
    %26 = vector.shape_cast %25 : vector<1x8x1xf32> to vector<8x1xf32>
    %27 = arith.mulf %21, %26 : vector<8x1xf32>
    %cst_17 = arith.constant dense<0.000000e+00> : vector<8xf32>
    %28 = vector.multi_reduction <add>, %24, %cst_17 [1] : vector<8x8xf32> to vector<8xf32>
    %29 = vector.shape_cast %28 : vector<8xf32> to vector<8x1xf32>
    %30 = arith.addf %27, %29 : vector<8x1xf32>
    %c0_18 = arith.constant 0 : index
    %c0_19 = arith.constant 0 : index
    %c0_20 = arith.constant 0 : index
    %31 = vector.load %arg8[%c0_18, %c0_19, %c0_20] : memref<4x8x1xf32, #tpu.memory_space<vmem>>, vector<1x8x1xf32>
    %32 = vector.shape_cast %31 : vector<1x8x1xf32> to vector<8x1xf32>
    %33 = vector.shape_cast %30 : vector<8x1xf32> to vector<1x8x1xf32>
    tpu.vector_store %arg8[%c0_18, %c0_19, %c0_20], %33 {strides = array<i32>} : memref<4x8x1xf32, #tpu.memory_space<vmem>>, vector<1x8x1xf32>,
    %c0_21 = arith.constant 0 : index
    %c0_22 = arith.constant 0 : index
    %c0_23 = arith.constant 0 : index
    %34 = vector.load %arg9[%c0_21, %c0_22, %c0_23] : memref<4x8x8xf32, #tpu.memory_space<vmem>>, vector<1x8x8xf32>
    %35 = vector.shape_cast %34 : vector<1x8x8xf32> to vector<8x8xf32>
    %36 = vector.broadcast %21 : vector<8x1xf32> to vector<8x8xf32>
    %37 = arith.mulf %36, %35 : vector<8x8xf32>
    %cst_24 = arith.constant dense<0.000000e+00> : vector<8x8xf32>
    %38 = tpu.matmul %24, %13, %cst_24 {dimension_numbers = #tpu.dot_dimension_numbers<[1], [0], [0], [1], [0, 0, 1, 1], [], []>} : vector<8x8xf32>, vector<8x8xf32>, vector<8x8xf32> -> vector<8x8xf32>
    %39 = arith.addf %37, %38 : vector<8x8xf32>
    %c0_25 = arith.constant 0 : index
    %c0_26 = arith.constant 0 : index
    %c0_27 = arith.constant 0 : index
    %40 = vector.load %arg9[%c0_25, %c0_26, %c0_27] : memref<4x8x8xf32, #tpu.memory_space<vmem>>, vector<1x8x8xf32>
    %41 = vector.shape_cast %40 : vector<1x8x8xf32> to vector<8x8xf32>
    %42 = vector.shape_cast %39 : vector<8x8xf32> to vector<1x8x8xf32>
    tpu.vector_store %arg9[%c0_25, %c0_26, %c0_27], %42 {strides = array<i32>} : memref<4x8x8xf32, #tpu.memory_space<vmem>>, vector<1x8x8xf32>,
    %c0_28 = arith.constant 0 : index
    %c0_29 = arith.constant 0 : index
    %c0_30 = arith.constant 0 : index
    %43 = vector.load %arg7[%c0_28, %c0_29, %c0_30] : memref<4x8x1xf32, #tpu.memory_space<vmem>>, vector<1x8x1xf32>
    %44 = vector.shape_cast %43 : vector<1x8x1xf32> to vector<8x1xf32>
    %45 = vector.shape_cast %19 : vector<8x1xf32> to vector<1x8x1xf32>
    tpu.vector_store %arg7[%c0_28, %c0_29, %c0_30], %45 {strides = array<i32>} : memref<4x8x1xf32, #tpu.memory_space<vmem>>, vector<1x8x1xf32>,
    %46 = vector.extract_strided_slice %4 {offsets = [0, 8], sizes = [8, 8], strides = [1, 1]} : vector<8x32xf32> to vector<8x8xf32>
    %cst_31 = arith.constant 0.353553385 : f32
    %47 = vector.broadcast %cst_31 : f32 to vector<8x8xf32>
    %48 = arith.mulf %46, %47 : vector<8x8xf32>
    %49 = vector.extract_strided_slice %6 {offsets = [0, 8], sizes = [8, 8], strides = [1, 1]} : vector<8x32xf32> to vector<8x8xf32>
    %50 = vector.extract_strided_slice %8 {offsets = [0, 8], sizes = [8, 8], strides = [1, 1]} : vector<8x32xf32> to vector<8x8xf32>
    %cst_32 = arith.constant dense<0.000000e+00> : vector<8x8xf32>
    %51 = tpu.matmul %48, %49, %cst_32 {dimension_numbers = #tpu.dot_dimension_numbers<[1], [1], [0], [0], [0, 0, 1, 0], [], []>} : vector<8x8xf32>, vector<8x8xf32>, vector<8x8xf32> -> vector<8x8xf32>
    %c1 = arith.constant 1 : index
    %c0_33 = arith.constant 0 : index
    %c0_34 = arith.constant 0 : index
    %52 = vector.load %arg7[%c1, %c0_33, %c0_34] : memref<4x8x1xf32, #tpu.memory_space<vmem>>, vector<1x8x1xf32>
    %53 = vector.shape_cast %52 : vector<1x8x1xf32> to vector<8x1xf32>
    %cst_35 = arith.constant dense<0xFF800000> : vector<8xf32>
    %54 = vector.multi_reduction <maximumf>, %51, %cst_35 [1] : vector<8x8xf32> to vector<8xf32>
    %55 = vector.shape_cast %54 : vector<8xf32> to vector<8x1xf32>
    %56 = arith.maximumf %53, %55 : vector<8x1xf32>
    %57 = arith.subf %53, %56 : vector<8x1xf32>
    %58 = math.exp %57 : vector<8x1xf32>
    %59 = vector.broadcast %56 : vector<8x1xf32> to vector<8x8xf32>
    %60 = arith.subf %51, %59 : vector<8x8xf32>
    %61 = math.exp %60 : vector<8x8xf32>
    %c1_36 = arith.constant 1 : index
    %c0_37 = arith.constant 0 : index
    %c0_38 = arith.constant 0 : index
    %62 = vector.load %arg8[%c1_36, %c0_37, %c0_38] : memref<4x8x1xf32, #tpu.memory_space<vmem>>, vector<1x8x1xf32>
    %63 = vector.shape_cast %62 : vector<1x8x1xf32> to vector<8x1xf32>
    %64 = arith.mulf %58, %63 : vector<8x1xf32>
    %cst_39 = arith.constant dense<0.000000e+00> : vector<8xf32>
    %65 = vector.multi_reduction <add>, %61, %cst_39 [1] : vector<8x8xf32> to vector<8xf32>
    %66 = vector.shape_cast %65 : vector<8xf32> to vector<8x1xf32>
    %67 = arith.addf %64, %66 : vector<8x1xf32>
    %c1_40 = arith.constant 1 : index
    %c0_41 = arith.constant 0 : index
    %c0_42 = arith.constant 0 : index
    %68 = vector.load %arg8[%c1_40, %c0_41, %c0_42] : memref<4x8x1xf32, #tpu.memory_space<vmem>>, vector<1x8x1xf32>
    %69 = vector.shape_cast %68 : vector<1x8x1xf32> to vector<8x1xf32>
    %70 = vector.shape_cast %67 : vector<8x1xf32> to vector<1x8x1xf32>
    tpu.vector_store %arg8[%c1_40, %c0_41, %c0_42], %70 {strides = array<i32>} : memref<4x8x1xf32, #tpu.memory_space<vmem>>, vector<1x8x1xf32>,
    %c1_43 = arith.constant 1 : index
    %c0_44 = arith.constant 0 : index
    %c0_45 = arith.constant 0 : index
    %71 = vector.load %arg9[%c1_43, %c0_44, %c0_45] : memref<4x8x8xf32, #tpu.memory_space<vmem>>, vector<1x8x8xf32>
    %72 = vector.shape_cast %71 : vector<1x8x8xf32> to vector<8x8xf32>
    %73 = vector.broadcast %58 : vector<8x1xf32> to vector<8x8xf32>
    %74 = arith.mulf %73, %72 : vector<8x8xf32>
    %cst_46 = arith.constant dense<0.000000e+00> : vector<8x8xf32>
    %75 = tpu.matmul %61, %50, %cst_46 {dimension_numbers = #tpu.dot_dimension_numbers<[1], [0], [0], [1], [0, 0, 1, 1], [], []>} : vector<8x8xf32>, vector<8x8xf32>, vector<8x8xf32> -> vector<8x8xf32>
    %76 = arith.addf %74, %75 : vector<8x8xf32>
    %c1_47 = arith.constant 1 : index
    %c0_48 = arith.constant 0 : index
    %c0_49 = arith.constant 0 : index
    %77 = vector.load %arg9[%c1_47, %c0_48, %c0_49] : memref<4x8x8xf32, #tpu.memory_space<vmem>>, vector<1x8x8xf32>
    %78 = vector.shape_cast %77 : vector<1x8x8xf32> to vector<8x8xf32>
    %79 = vector.shape_cast %76 : vector<8x8xf32> to vector<1x8x8xf32>
    tpu.vector_store %arg9[%c1_47, %c0_48, %c0_49], %79 {strides = array<i32>} : memref<4x8x8xf32, #tpu.memory_space<vmem>>, vector<1x8x8xf32>,
    %c1_50 = arith.constant 1 : index
    %c0_51 = arith.constant 0 : index
    %c0_52 = arith.constant 0 : index
    %80 = vector.load %arg7[%c1_50, %c0_51, %c0_52] : memref<4x8x1xf32, #tpu.memory_space<vmem>>, vector<1x8x1xf32>
    %81 = vector.shape_cast %80 : vector<1x8x1xf32> to vector<8x1xf32>
    %82 = vector.shape_cast %56 : vector<8x1xf32> to vector<1x8x1xf32>
    tpu.vector_store %arg7[%c1_50, %c0_51, %c0_52], %82 {strides = array<i32>} : memref<4x8x1xf32, #tpu.memory_space<vmem>>, vector<1x8x1xf32>,
    %83 = vector.extract_strided_slice %4 {offsets = [0, 16], sizes = [8, 8], strides = [1, 1]} : vector<8x32xf32> to vector<8x8xf32>
    %cst_53 = arith.constant 0.353553385 : f32
    %84 = vector.broadcast %cst_53 : f32 to vector<8x8xf32>
    %85 = arith.mulf %83, %84 : vector<8x8xf32>
    %86 = vector.extract_strided_slice %6 {offsets = [0, 16], sizes = [8, 8], strides = [1, 1]} : vector<8x32xf32> to vector<8x8xf32>
    %87 = vector.extract_strided_slice %8 {offsets = [0, 16], sizes = [8, 8], strides = [1, 1]} : vector<8x32xf32> to vector<8x8xf32>
    %cst_54 = arith.constant dense<0.000000e+00> : vector<8x8xf32>
    %88 = tpu.matmul %85, %86, %cst_54 {dimension_numbers = #tpu.dot_dimension_numbers<[1], [1], [0], [0], [0, 0, 1, 0], [], []>} : vector<8x8xf32>, vector<8x8xf32>, vector<8x8xf32> -> vector<8x8xf32>
    %c2 = arith.constant 2 : index
    %c0_55 = arith.constant 0 : index
    %c0_56 = arith.constant 0 : index
    %89 = vector.load %arg7[%c2, %c0_55, %c0_56] : memref<4x8x1xf32, #tpu.memory_space<vmem>>, vector<1x8x1xf32>
    %90 = vector.shape_cast %89 : vector<1x8x1xf32> to vector<8x1xf32>
    %cst_57 = arith.constant dense<0xFF800000> : vector<8xf32>
    %91 = vector.multi_reduction <maximumf>, %88, %cst_57 [1] : vector<8x8xf32> to vector<8xf32>
    %92 = vector.shape_cast %91 : vector<8xf32> to vector<8x1xf32>
    %93 = arith.maximumf %90, %92 : vector<8x1xf32>
    %94 = arith.subf %90, %93 : vector<8x1xf32>
    %95 = math.exp %94 : vector<8x1xf32>
    %96 = vector.broadcast %93 : vector<8x1xf32> to vector<8x8xf32>
    %97 = arith.subf %88, %96 : vector<8x8xf32>
    %98 = math.exp %97 : vector<8x8xf32>
    %c2_58 = arith.constant 2 : index
    %c0_59 = arith.constant 0 : index
    %c0_60 = arith.constant 0 : index
    %99 = vector.load %arg8[%c2_58, %c0_59, %c0_60] : memref<4x8x1xf32, #tpu.memory_space<vmem>>, vector<1x8x1xf32>
    %100 = vector.shape_cast %99 : vector<1x8x1xf32> to vector<8x1xf32>
    %101 = arith.mulf %95, %100 : vector<8x1xf32>
    %cst_61 = arith.constant dense<0.000000e+00> : vector<8xf32>
    %102 = vector.multi_reduction <add>, %98, %cst_61 [1] : vector<8x8xf32> to vector<8xf32>
    %103 = vector.shape_cast %102 : vector<8xf32> to vector<8x1xf32>
    %104 = arith.addf %101, %103 : vector<8x1xf32>
    %c2_62 = arith.constant 2 : index
    %c0_63 = arith.constant 0 : index
    %c0_64 = arith.constant 0 : index
    %105 = vector.load %arg8[%c2_62, %c0_63, %c0_64] : memref<4x8x1xf32, #tpu.memory_space<vmem>>, vector<1x8x1xf32>
    %106 = vector.shape_cast %105 : vector<1x8x1xf32> to vector<8x1xf32>
    %107 = vector.shape_cast %104 : vector<8x1xf32> to vector<1x8x1xf32>
    tpu.vector_store %arg8[%c2_62, %c0_63, %c0_64], %107 {strides = array<i32>} : memref<4x8x1xf32, #tpu.memory_space<vmem>>, vector<1x8x1xf32>,
    %c2_65 = arith.constant 2 : index
    %c0_66 = arith.constant 0 : index
    %c0_67 = arith.constant 0 : index
    %108 = vector.load %arg9[%c2_65, %c0_66, %c0_67] : memref<4x8x8xf32, #tpu.memory_space<vmem>>, vector<1x8x8xf32>
    %109 = vector.shape_cast %108 : vector<1x8x8xf32> to vector<8x8xf32>
    %110 = vector.broadcast %95 : vector<8x1xf32> to vector<8x8xf32>
    %111 = arith.mulf %110, %109 : vector<8x8xf32>
    %cst_68 = arith.constant dense<0.000000e+00> : vector<8x8xf32>
    %112 = tpu.matmul %98, %87, %cst_68 {dimension_numbers = #tpu.dot_dimension_numbers<[1], [0], [0], [1], [0, 0, 1, 1], [], []>} : vector<8x8xf32>, vector<8x8xf32>, vector<8x8xf32> -> vector<8x8xf32>
    %113 = arith.addf %111, %112 : vector<8x8xf32>
    %c2_69 = arith.constant 2 : index
    %c0_70 = arith.constant 0 : index
    %c0_71 = arith.constant 0 : index
    %114 = vector.load %arg9[%c2_69, %c0_70, %c0_71] : memref<4x8x8xf32, #tpu.memory_space<vmem>>, vector<1x8x8xf32>
    %115 = vector.shape_cast %114 : vector<1x8x8xf32> to vector<8x8xf32>
    %116 = vector.shape_cast %113 : vector<8x8xf32> to vector<1x8x8xf32>
    tpu.vector_store %arg9[%c2_69, %c0_70, %c0_71], %116 {strides = array<i32>} : memref<4x8x8xf32, #tpu.memory_space<vmem>>, vector<1x8x8xf32>,
    %c2_72 = arith.constant 2 : index
    %c0_73 = arith.constant 0 : index
    %c0_74 = arith.constant 0 : index
    %117 = vector.load %arg7[%c2_72, %c0_73, %c0_74] : memref<4x8x1xf32, #tpu.memory_space<vmem>>, vector<1x8x1xf32>
    %118 = vector.shape_cast %117 : vector<1x8x1xf32> to vector<8x1xf32>
    %119 = vector.shape_cast %93 : vector<8x1xf32> to vector<1x8x1xf32>
    tpu.vector_store %arg7[%c2_72, %c0_73, %c0_74], %119 {strides = array<i32>} : memref<4x8x1xf32, #tpu.memory_space<vmem>>, vector<1x8x1xf32>,
    %120 = vector.extract_strided_slice %4 {offsets = [0, 24], sizes = [8, 8], strides = [1, 1]} : vector<8x32xf32> to vector<8x8xf32>
    %cst_75 = arith.constant 0.353553385 : f32
    %121 = vector.broadcast %cst_75 : f32 to vector<8x8xf32>
    %122 = arith.mulf %120, %121 : vector<8x8xf32>
    %123 = vector.extract_strided_slice %6 {offsets = [0, 24], sizes = [8, 8], strides = [1, 1]} : vector<8x32xf32> to vector<8x8xf32>
    %124 = vector.extract_strided_slice %8 {offsets = [0, 24], sizes = [8, 8], strides = [1, 1]} : vector<8x32xf32> to vector<8x8xf32>
    %cst_76 = arith.constant dense<0.000000e+00> : vector<8x8xf32>
    %125 = tpu.matmul %122, %123, %cst_76 {dimension_numbers = #tpu.dot_dimension_numbers<[1], [1], [0], [0], [0, 0, 1, 0], [], []>} : vector<8x8xf32>, vector<8x8xf32>, vector<8x8xf32> -> vector<8x8xf32>
    %c3 = arith.constant 3 : index
    %c0_77 = arith.constant 0 : index
    %c0_78 = arith.constant 0 : index
    %126 = vector.load %arg7[%c3, %c0_77, %c0_78] : memref<4x8x1xf32, #tpu.memory_space<vmem>>, vector<1x8x1xf32>
    %127 = vector.shape_cast %126 : vector<1x8x1xf32> to vector<8x1xf32>
    %cst_79 = arith.constant dense<0xFF800000> : vector<8xf32>
    %128 = vector.multi_reduction <maximumf>, %125, %cst_79 [1] : vector<8x8xf32> to vector<8xf32>
    %129 = vector.shape_cast %128 : vector<8xf32> to vector<8x1xf32>
    %130 = arith.maximumf %127, %129 : vector<8x1xf32>
    %131 = arith.subf %127, %130 : vector<8x1xf32>
    %132 = math.exp %131 : vector<8x1xf32>
    %133 = vector.broadcast %130 : vector<8x1xf32> to vector<8x8xf32>
    %134 = arith.subf %125, %133 : vector<8x8xf32>
    %135 = math.exp %134 : vector<8x8xf32>
    %c3_80 = arith.constant 3 : index
    %c0_81 = arith.constant 0 : index
    %c0_82 = arith.constant 0 : index
    %136 = vector.load %arg8[%c3_80, %c0_81, %c0_82] : memref<4x8x1xf32, #tpu.memory_space<vmem>>, vector<1x8x1xf32>
    %137 = vector.shape_cast %136 : vector<1x8x1xf32> to vector<8x1xf32>
    %138 = arith.mulf %132, %137 : vector<8x1xf32>
    %cst_83 = arith.constant dense<0.000000e+00> : vector<8xf32>
    %139 = vector.multi_reduction <add>, %135, %cst_83 [1] : vector<8x8xf32> to vector<8xf32>
    %140 = vector.shape_cast %139 : vector<8xf32> to vector<8x1xf32>
    %141 = arith.addf %138, %140 : vector<8x1xf32>
    %c3_84 = arith.constant 3 : index
    %c0_85 = arith.constant 0 : index
    %c0_86 = arith.constant 0 : index
    %142 = vector.load %arg8[%c3_84, %c0_85, %c0_86] : memref<4x8x1xf32, #tpu.memory_space<vmem>>, vector<1x8x1xf32>
    %143 = vector.shape_cast %142 : vector<1x8x1xf32> to vector<8x1xf32>
    %144 = vector.shape_cast %141 : vector<8x1xf32> to vector<1x8x1xf32>
    tpu.vector_store %arg8[%c3_84, %c0_85, %c0_86], %144 {strides = array<i32>} : memref<4x8x1xf32, #tpu.memory_space<vmem>>, vector<1x8x1xf32>,
    %c3_87 = arith.constant 3 : index
    %c0_88 = arith.constant 0 : index
    %c0_89 = arith.constant 0 : index
    %145 = vector.load %arg9[%c3_87, %c0_88, %c0_89] : memref<4x8x8xf32, #tpu.memory_space<vmem>>, vector<1x8x8xf32>
    %146 = vector.shape_cast %145 : vector<1x8x8xf32> to vector<8x8xf32>
    %147 = vector.broadcast %132 : vector<8x1xf32> to vector<8x8xf32>
    %148 = arith.mulf %147, %146 : vector<8x8xf32>
    %cst_90 = arith.constant dense<0.000000e+00> : vector<8x8xf32>
    %149 = tpu.matmul %135, %124, %cst_90 {dimension_numbers = #tpu.dot_dimension_numbers<[1], [0], [0], [1], [0, 0, 1, 1], [], []>} : vector<8x8xf32>, vector<8x8xf32>, vector<8x8xf32> -> vector<8x8xf32>
    %150 = arith.addf %148, %149 : vector<8x8xf32>
    %c3_91 = arith.constant 3 : index
    %c0_92 = arith.constant 0 : index
    %c0_93 = arith.constant 0 : index
    %151 = vector.load %arg9[%c3_91, %c0_92, %c0_93] : memref<4x8x8xf32, #tpu.memory_space<vmem>>, vector<1x8x8xf32>
    %152 = vector.shape_cast %151 : vector<1x8x8xf32> to vector<8x8xf32>
    %153 = vector.shape_cast %150 : vector<8x8xf32> to vector<1x8x8xf32>
    tpu.vector_store %arg9[%c3_91, %c0_92, %c0_93], %153 {strides = array<i32>} : memref<4x8x8xf32, #tpu.memory_space<vmem>>, vector<1x8x8xf32>,
    %c3_94 = arith.constant 3 : index
    %c0_95 = arith.constant 0 : index
    %c0_96 = arith.constant 0 : index
    %154 = vector.load %arg7[%c3_94, %c0_95, %c0_96] : memref<4x8x1xf32, #tpu.memory_space<vmem>>, vector<1x8x1xf32>
    %155 = vector.shape_cast %154 : vector<1x8x1xf32> to vector<8x1xf32>
    %156 = vector.shape_cast %130 : vector<8x1xf32> to vector<1x8x1xf32>
    tpu.vector_store %arg7[%c3_94, %c0_95, %c0_96], %156 {strides = array<i32>} : memref<4x8x1xf32, #tpu.memory_space<vmem>>, vector<1x8x1xf32>,
    %c0_i32_97 = arith.constant 0 : i32
    %157 = arith.cmpi eq, %arg2, %c0_i32_97 : i32
    %158 = arith.extui %157 : i1 to i32
    %c0_i32_98 = arith.constant 0 : i32
    %159 = arith.cmpi ne, %158, %c0_i32_98 : i32
    scf.if %159 {
      %c0_99 = arith.constant 0 : index
      %c0_100 = arith.constant 0 : index
      %c0_101 = arith.constant 0 : index
      %160 = vector.load %arg8[%c0_99, %c0_100, %c0_101] : memref<4x8x1xf32, #tpu.memory_space<vmem>>, vector<1x8x1xf32>
      %161 = vector.shape_cast %160 : vector<1x8x1xf32> to vector<8x1xf32>
      %162 = tpu.reciprocal %161 : vector<8x1xf32> -> vector<8x1xf32>
      %c0_102 = arith.constant 0 : index
      %c0_103 = arith.constant 0 : index
      %c0_104 = arith.constant 0 : index
      %163 = vector.load %arg9[%c0_102, %c0_103, %c0_104] : memref<4x8x8xf32, #tpu.memory_space<vmem>>, vector<1x8x8xf32>
      %164 = vector.shape_cast %163 : vector<1x8x8xf32> to vector<8x8xf32>
      %165 = vector.broadcast %162 : vector<8x1xf32> to vector<8x8xf32>
      %166 = arith.mulf %164, %165 : vector<8x8xf32>
      %c1_105 = arith.constant 1 : index
      %c0_106 = arith.constant 0 : index
      %c0_107 = arith.constant 0 : index
      %167 = vector.load %arg8[%c1_105, %c0_106, %c0_107] : memref<4x8x1xf32, #tpu.memory_space<vmem>>, vector<1x8x1xf32>
      %168 = vector.shape_cast %167 : vector<1x8x1xf32> to vector<8x1xf32>
      %169 = tpu.reciprocal %168 : vector<8x1xf32> -> vector<8x1xf32>
      %c1_108 = arith.constant 1 : index
      %c0_109 = arith.constant 0 : index
      %c0_110 = arith.constant 0 : index
      %170 = vector.load %arg9[%c1_108, %c0_109, %c0_110] : memref<4x8x8xf32, #tpu.memory_space<vmem>>, vector<1x8x8xf32>
      %171 = vector.shape_cast %170 : vector<1x8x8xf32> to vector<8x8xf32>
      %172 = vector.broadcast %169 : vector<8x1xf32> to vector<8x8xf32>
      %173 = arith.mulf %171, %172 : vector<8x8xf32>
      %c2_111 = arith.constant 2 : index
      %c0_112 = arith.constant 0 : index
      %c0_113 = arith.constant 0 : index
      %174 = vector.load %arg8[%c2_111, %c0_112, %c0_113] : memref<4x8x1xf32, #tpu.memory_space<vmem>>, vector<1x8x1xf32>
      %175 = vector.shape_cast %174 : vector<1x8x1xf32> to vector<8x1xf32>
      %176 = tpu.reciprocal %175 : vector<8x1xf32> -> vector<8x1xf32>
      %c2_114 = arith.constant 2 : index
      %c0_115 = arith.constant 0 : index
      %c0_116 = arith.constant 0 : index
      %177 = vector.load %arg9[%c2_114, %c0_115, %c0_116] : memref<4x8x8xf32, #tpu.memory_space<vmem>>, vector<1x8x8xf32>
      %178 = vector.shape_cast %177 : vector<1x8x8xf32> to vector<8x8xf32>
      %179 = vector.broadcast %176 : vector<8x1xf32> to vector<8x8xf32>
      %180 = arith.mulf %178, %179 : vector<8x8xf32>
      %c3_117 = arith.constant 3 : index
      %c0_118 = arith.constant 0 : index
      %c0_119 = arith.constant 0 : index
      %181 = vector.load %arg8[%c3_117, %c0_118, %c0_119] : memref<4x8x1xf32, #tpu.memory_space<vmem>>, vector<1x8x1xf32>
      %182 = vector.shape_cast %181 : vector<1x8x1xf32> to vector<8x1xf32>
      %183 = tpu.reciprocal %182 : vector<8x1xf32> -> vector<8x1xf32>
      %c3_120 = arith.constant 3 : index
      %c0_121 = arith.constant 0 : index
      %c0_122 = arith.constant 0 : index
      %184 = vector.load %arg9[%c3_120, %c0_121, %c0_122] : memref<4x8x8xf32, #tpu.memory_space<vmem>>, vector<1x8x8xf32>
      %185 = vector.shape_cast %184 : vector<1x8x8xf32> to vector<8x8xf32>
      %186 = vector.broadcast %183 : vector<8x1xf32> to vector<8x8xf32>
      %187 = arith.mulf %185, %186 : vector<8x8xf32>
      %188 = tpu.concatenate %166, %173, %180, %187 in 1 : vector<8x8xf32>, vector<8x8xf32>, vector<8x8xf32>, vector<8x8xf32> -> vector<8x32xf32>
      %c0_123 = arith.constant 0 : index
      %c0_124 = arith.constant 0 : index
      %c0_125 = arith.constant 0 : index
      %189 = vector.load %arg6[%c0_123, %c0_124, %c0_125] : memref<1x8x32xf32, #tpu.memory_space<vmem>>, vector<1x8x32xf32>
      %190 = vector.shape_cast %189 : vector<1x8x32xf32> to vector<8x32xf32>
      %191 = vector.shape_cast %188 : vector<8x32xf32> to vector<1x8x32xf32>
      tpu.vector_store %arg6[%c0_123, %c0_124, %c0_125], %191 {strides = array<i32>} : memref<1x8x32xf32, #tpu.memory_space<vmem>>, vector<1x8x32xf32>,
    } else {
    }
    return
  }
  func.func @transform_0(%arg0: i32, %arg1: i32, %arg2: i32) -> (i32, i32, i32) {
    %c0_i32 = arith.constant 0 : i32
    %c0_i32_0 = arith.constant 0 : i32
    return %arg0, %arg1, %c0_i32 : i32, i32, i32
  }
  func.func @transform_1(%arg0: i32, %arg1: i32, %arg2: i32) -> (i32, i32, i32) {
    %c0_i32 = arith.constant 0 : i32
    %c0_i32_0 = arith.constant 0 : i32
    return %arg0, %arg2, %c0_i32 : i32, i32, i32
  }
  func.func @transform_2(%arg0: i32, %arg1: i32, %arg2: i32) -> (i32, i32, i32) {
    %c0_i32 = arith.constant 0 : i32
    %c0_i32_0 = arith.constant 0 : i32
    return %arg0, %arg2, %c0_i32 : i32, i32, i32
  }
  func.func @transform_3(%arg0: i32, %arg1: i32, %arg2: i32) -> (i32, i32, i32) {
    %c0_i32 = arith.constant 0 : i32
    %c0_i32_0 = arith.constant 0 : i32
    return %arg0, %arg1, %c0_i32 : i32, i32, i32
  }
}

</mosaic_0001>

<bundles_post_ra>
// kernel: tpu_custom_call.1
= control target key start
LH: loop header
LB: loop body
LE: loop exit
PB: predicated region body
PF: predicated region fallthrough
CT: control target
= control target key end

     0   :  { %s2037_s0 = inlined_call_operand.hbm [shape: f32[2,8,32], index: 0, kind: input, shape index: {}]   ;;  %s2038_s1 = inlined_call_operand.hbm [shape: f32[2,8,32], index: 1, kind: input, shape index: {}]   ;;  %s2039_s2 = inlined_call_operand.hbm [shape: f32[2,8,32], index: 2, kind: input, shape index: {}]   ;;  %s2040_s3 = inlined_call_operand.hbm [shape: f32[2,8,32], index: 3, kind: output, shape index: {}]  }
   0x1   :  { %2046 = sst [smem:[#allocation18_spill]] %s2038_s1 }
   0x2   :  { %8 = vsyncpa [#allocation6], 0 }
   0x3   :  { %10 = vsyncpa [#allocation6 + $0x1], 0 }
   0x4   :  { %11 = vsyncpa [#allocation9], 0 }
   0x5   :  { %13 = vsyncpa [#allocation9 + $0x1], 0 }
   0x6   :  { %14 = vsyncpa [#allocation7], 0 }
   0x7   :  { %16 = vsyncpa [#allocation7 + $0x1], 0  ;;  %s1672_s12 = smov 0   ;;  %s1674_s13 = smov 0  }
   0x8   :  { %s1676_s14 = smov 0   ;;  %s1678_s15 = smov 0  }
   0x9   :  { %s1680_s16 = smov 0   ;;  %s1682_s17 = smov 0  }
   0xa LB: > { %2047 = sst [smem:[#allocation15_spill]] %s1632_s16  ;;  %s1703_s18 = sadd.s32 4294967295, %s1636_s17   ;;  %s1636_s17 = sphi %s1682_s17, %s22_s17   ;;  %s1632_s16 = sphi %s1680_s16, %s2068_s16   ;;  %s1628_s15 = sphi %s1678_s15, %s2067_s15   ;;  %s1624_s14 = sphi %s1676_s14, %s2071_s14   ;;  %s1620_s13 = sphi %s1674_s13, %s2070_s13   ;;  %s1616_s12 = sphi %s1672_s12, %s2069_s12  }
   0xb   : > { %s1266_s19 = sadd.s32 4294967294, %s1636_s17   ;;  %s41_s20 = sadd.s32 1, %s1632_s16 }
   0xc   : > { %s50_s21 = sadd.s32 1, %s1624_s14  ;;  %p43_p0 = scmp.ge.s32.totalorder %s41_s20, 2 }
   0xd   : > { %p57_p1 = scmp.ne.s32.totalorder %s1624_s14, %s1620_s13  ;;  %p58_p2 = scmp.eq.s32.totalorder %s1636_s17, 0 }
   0xe   : > { %p63_p3 = scmp.ne.s32.totalorder %s1620_s13, %s1616_s12  ;;  %s2073_s20 = smov (%p43_p0, %s41_s20), 0 }
   0xf   : > { %2048 = sst [smem:[#allocation16_spill]] %s2073_s20  ;;  %p1715_p4 = por %p58_p2, %p57_p1 }
  0x10   : > { %p64_p5 = scmp.eq.s32.totalorder %s1703_s18, 0  ;;  %s45_s23 = ssub.s32 %s1632_s16, %s2073_s20 }
  0x11   : > { %p145_p6 = scmp.eq.s32.totalorder %s1703_s18, 1  ;;  %p48_p7 = scmp.eq.s32.totalorder %s45_s23, 0 }
  0x12   : > { %p1723_p8 = por %p64_p5, %p63_p3  ;;  %p151_p10 = scmp.eq.s32.totalorder %s1266_s19, 1 }
  0x13   : > { %p1727_p9 = por %p145_p6, %p57_p1  ;;  %p1374_p13 = scmp.lt.s32.totalorder %s1636_s17, 2 }
  0x14   : > { %s2050_s24 = scalar_select %p1723_p8, 1, 0 }
  0x15   : > { %s2051_s25 = scalar_select %p1727_p9, 1, 0 }
  0x16   : > { %s1732_s26 = scalar_select %p48_p7, %s1624_s14, %s50_s21  }
  0x17   : > { %p1734_p11 = por %p151_p10, %p63_p3  ;;  %s171_s28 = sand.u32 1, %s1624_s14  }
  0x18   : > { %2052 = sst [smem:[#allocation17_spill]] %s1732_s26  ;;  %s1743_s29 = sshll.u32 %s171_s28, 3 }
  0x19   : > { %s2053_s27 = scalar_select %p1734_p11, 1, 0 }
  0x1a   : > { %s1746_s30 = sshll.u32 %s1632_s16, 7  ;;  %p1750_p0 = pnand %p1374_p13, %p1715_p4 }
  0x1b   : > { %s190_s5 = sand.u32 1, %s1636_s17   ;;  %s2055_s1 = sld [smem:[#allocation18_spill]] }
  0x1c   : > { %s2054_s4 = scalar_select %p1750_p0, 1, 0 }
  0x1d   : > { %s194_s9 = scalar_lea.vmem [#allocation8], %s1743_s29  ;;  %s1766_s11 = scalar_lea.sflag [#allocation9], %s190_s5 }
  0x1e   : > { %s202_s10 = sshll.u32 %s194_s9, 4  ;;  %p1772_p4 = pneg %p1750_p0  ;;  %s1763_s10 = int_to_ptr.vmem [resolvable:$true] %s202_s10 }
  0x21   : > { %s1759_s8 = scalar_lea.hbm %s2055_s1, %s1746_s30  ;;  %s1465_s6 = scalar_lea.hbm %s2055_s1, 256 }
  0x22   : > { %s1460_s19 = scalar_lea.hbm %s1759_s8, 128  ;;  %p1466_p7 = scmp.lt.u32.totalorder %s1759_s8, %s2055_s1 }
  0x23   : > { %p1461_p3 = scmp.ne.s32.totalorder %s1759_s8, %s1460_s19  ;;  %p1467_p10 = scmp.lt.u32.totalorder %s1465_s6, %s1460_s19 }
  0x24   : > { %p1469_p12 = scmp.lt.u32.totalorder %s1460_s19, %s1759_s8 }
  0x25   : > { %p1463_p5 = pnand %p1772_p4, %p1461_p3  ;;  %p1468_p13 = por %p1467_p10, %p1466_p7 }
  0x27   : > { %p1464_p6 = pneg %p1463_p5  ;;  %p1470_p1 = por %p1469_p12, %p1468_p13 }
  0x29   : > { %p1471_p2 = pnand %p1470_p1, %p1464_p6 }
  0x2b   : > { %1474 = shalt.err (!%p1471_p2)
}
  0x2c   : > { %s1475_s5 = scalar_lea.vmem %s1763_s10, 128  ;;  %s1638_s22 = smov [#allocation8]  }
  0x2d   : > { %p1476_p3 = scmp.ne.s32.totalorder %s1763_s10, %s1475_s5  ;;  %s1480_s23 = sshll.u32 %s1638_s22, 4  ;;  %s1481_s23 = int_to_ptr.vmem [resolvable:$false] %s1480_s23 }
  0x2e   : > { %s1482_s7 = scalar_lea.vmem %s1481_s23, 256  ;;  %p1483_p9 = scmp.lt.s32.totalorder %s1763_s10, %s1481_s23 }
  0x2f   : > { %p1478_p5 = pnand %p1476_p3, %p1772_p4  ;;  %p1484_p8 = scmp.lt.s32.totalorder %s1482_s7, %s1475_s5 }
  0x31   : > { %p1479_p11 = pneg %p1478_p5  ;;  %p1485_p7 = por %p1484_p8, %p1483_p9 }
  0x33   : > { %p1486_p10 = pnand %p1485_p7, %p1479_p11 }
  0x35   : > { %1489 = shalt.err (!%p1486_p10)
}
  0x36   : > { %1366 = dma.hbm_to_vmem [thread:$0]  (!%p1750_p0), %s1759_s8, 128, %s1763_s10, %s1766_s11  }
  0x37   : > { %p2057_p12 = scmp.lt.s32.totalorder %s1636_s17, 3  ;;  %p2058_p1 = scmp.ge.s32.totalorder %s1636_s17, 1 }
  0x38   : > { %s1808_s5 = scalar_lea.hbm %s2037_s0, %s1746_s30  ;;  %s175_s22 = scalar_lea.vmem [#allocation5], %s1743_s29 }
  0x39   : > { %p1800_p2 = pnand %p2058_p1, %p2057_p12  ;;  %s183_s23 = sshll.u32 %s175_s22, 4  ;;  %s1811_s23 = int_to_ptr.vmem [resolvable:$true] %s183_s23 }
  0x3a   : > { %s1817_s7 = scalar_lea.hbm %s2039_s2, %s1746_s30  ;;  %s172_s1 = scalar_lea.sflag [#allocation6], %s171_s28 }
  0x3b   : > { %s2059_s19 = scalar_select %p1800_p2, 1, 0 }
  0x3c   : > { %s1490_s20 = scalar_lea.hbm %s1808_s5, 128  ;;  %s1495_s16 = scalar_lea.hbm %s2037_s0, 256 }
  0x3d   : > { %p1491_p8 = scmp.ne.s32.totalorder %s1808_s5, %s1490_s20  ;;  %p1496_p6 = scmp.lt.u32.totalorder %s1808_s5, %s2037_s0 }
  0x3e   : > { %p1497_p13 = scmp.lt.u32.totalorder %s1495_s16, %s1490_s20  ;;  %p1499_p5 = scmp.lt.u32.totalorder %s1490_s20, %s1808_s5 }
  0x3f   : > { %p1493_p9 = pnand %p1491_p8, %p1772_p4 }
  0x40   : > { %p1498_p3 = por %p1497_p13, %p1496_p6 }
  0x41   : > { %p1494_p11 = pneg %p1493_p9 }
  0x42   : > { %p1500_p7 = por %p1499_p5, %p1498_p3 }
  0x44   : > { %p1501_p10 = pnand %p1500_p7, %p1494_p11 }
  0x46   : > { %1504 = shalt.err (!%p1501_p10)
}
  0x47   : > { %s1505_s28 = scalar_lea.vmem %s1811_s23, 128  ;;  %s1639_s30 = smov [#allocation5]  }
  0x48   : > { %p1506_p12 = scmp.ne.s32.totalorder %s1811_s23, %s1505_s28  ;;  %s1510_s8 = sshll.u32 %s1639_s30, 4  ;;  %s1511_s8 = int_to_ptr.vmem [resolvable:$false] %s1510_s8 }
  0x49   : > { %s1512_s26 = scalar_lea.vmem %s1511_s8, 256  ;;  %p1513_p9 = scmp.lt.s32.totalorder %s1811_s23, %s1511_s8 }
  0x4a   : > { %p1508_p1 = pnand %p1506_p12, %p1772_p4  ;;  %p1514_p2 = scmp.lt.s32.totalorder %s1512_s26, %s1505_s28 }
  0x4c   : > { %p1509_p8 = pneg %p1508_p1  ;;  %p1515_p6 = por %p1514_p2, %p1513_p9 }
  0x4e   : > { %p1516_p13 = pnand %p1515_p6, %p1509_p8 }
  0x50   : > { %1519 = shalt.err (!%p1516_p13)
}
  0x51   : > { %1363 = dma.hbm_to_vmem [thread:$0]  (!%p1750_p0), %s1808_s5, 128, %s1811_s23, %s172_s1  }
  0x52   : > { %s213_s16 = scalar_lea.vmem [#allocation10], %s1743_s29  ;;  %s1520_s10 = scalar_lea.hbm %s1817_s7, 128 }
  0x53   : > { %s221_s20 = sshll.u32 %s213_s16, 4  ;;  %p1521_p11 = scmp.ne.s32.totalorder %s1817_s7, %s1520_s10  ;;  %s222_s20 = int_to_ptr.vmem [resolvable:$true] %s221_s20 }
  0x54   : > { %s1525_s22 = scalar_lea.hbm %s2039_s2, 256  ;;  %p1526_p5 = scmp.lt.u32.totalorder %s1817_s7, %s2039_s2 }
  0x55   : > { %p1523_p2 = pnand %p1521_p11, %p1772_p4  ;;  %p1527_p7 = scmp.lt.u32.totalorder %s1525_s22, %s1520_s10 }
  0x56   : > { %p1529_p12 = scmp.lt.u32.totalorder %s1520_s10, %s1817_s7 }
  0x57   : > { %p1524_p3 = pneg %p1523_p2  ;;  %p1528_p10 = por %p1527_p7, %p1526_p5 }
  0x59   : > { %p1530_p1 = por %p1529_p12, %p1528_p10 }
  0x5b   : > { %p1531_p8 = pnand %p1530_p1, %p1524_p3 }
  0x5d   : > { %1534 = shalt.err (!%p1531_p8)
}
  0x5e   : > { %s1535_s1 = scalar_lea.vmem %s222_s20, 128  ;;  %s1640_s29 = smov [#allocation10]  }
  0x5f   : > { %p1536_p9 = scmp.ne.s32.totalorder %s222_s20, %s1535_s1  ;;  %s1540_s5 = sshll.u32 %s1640_s29, 4  ;;  %s1541_s5 = int_to_ptr.vmem [resolvable:$false] %s1540_s5 }
  0x60   : > { %s1542_s23 = scalar_lea.vmem %s1541_s5, 256  ;;  %p1543_p11 = scmp.lt.s32.totalorder %s222_s20, %s1541_s5 }
  0x61   : > { %p1538_p6 = pnand %p1536_p9, %p1772_p4  ;;  %p1544_p2 = scmp.lt.s32.totalorder %s1542_s23, %s1535_s1 }
  0x63   : > { %p1539_p13 = pneg %p1538_p6  ;;  %p1545_p0 = por %p1544_p2, %p1543_p11 }
  0x65   : > { %p1546_p5 = pnand %p1545_p0, %p1539_p13 }
  0x67   : > { %1549 = shalt.err (!%p1546_p5)
}
  0x68   : > { %p2060_p7 = scmp.ne.s32.totalorder %s2054_s4, 0  ;;  %p2061_p3 = scmp.ne.s32.totalorder %s2059_s19, 0 }
  0x69   : > { %s1864_s21 = sand.u32 (!%p2061_p3), 1, %s1620_s13   ;;  %p2062_p0 = scmp.ne.s32.totalorder (!%p2061_p3), %s2050_s24, 0 }
  0x6a   : > { %1369 = dma.hbm_to_vmem [thread:$0]  (!%p2060_p7), %s1817_s7, 128, %s222_s20, %s1766_s11  }
  0x6b   : > { %230 = sbr.rel (%p2061_p3) target bundleno = 1560 (0x618), region = 32  ;;  %s1867_s8 = sshll.u32 (!%p2061_p3), %s1864_s21, 3 }
  0x6c   : > { %s233_s26 = scalar_lea.sflag (!%p2061_p3), [#allocation6], %s1864_s21  ;;  %s236_s16 = scalar_lea.vmem (!%p2061_p3), [#allocation5], %s1867_s8 }
  0x72   : > { %1603 = dma.done.wait (%p2062_p0), %s233_s26, 128  }
  0x73   : > { %1605 = vsyncadd (%p2062_p0), %s233_s26, 4294967168  ;;  %s241_s4 = sand.u32 1, %s1703_s18   ;;  %s245_s19 = scalar_lea.vmem [#allocation8], %s1867_s8 }
  0x74   : > { %s242_s11 = scalar_lea.sflag [#allocation9], %s241_s4 }
  0x75   : > { %1607 = dma.done.wait (%p2062_p0), %s242_s11, 256  }
  0x76   : > { %1609 = vsyncadd (%p2062_p0), %s242_s11, 4294967040  ;;  %vm300_vm0 = vcmask 64512   ;;  %v1641_v0 = vmov 0.0   ;;  %vm1642_vm1 = vmmov 0   ;;  %v306_v1 = vld [vmem:[%s245_s19] sm:$0xff]  ;;  %v305_v2 = vld [vmem:[%s236_s16] sm:$0xff] }
  0x77   : > { %1312 = vmatprep.subr.mxu0 %v1641_v0  ;;  %301 = vst.msk [vmem:[#allocation4] sm:$0xff] %vm300_vm0, %v1641_v0  ;;  %302 = vst.msk [vmem:[#allocation4 + $0x8] sm:$0xff] %vm300_vm0, %v1641_v0  ;;  %1314 = vmatprep.mubr.msk.f32.mxu0 %vm1642_vm1, %v1641_v0  ;;  %v308_v3 = vmul.f32 0.35355338, %v305_v2  ;;  %vm291_vm2 = vcmask 7168   ;;  %v1643_v4 = vmov -inf  }
  0x78   : > { %303 = vst.msk [vmem:[#allocation4 + $0x10] sm:$0xff] %vm300_vm0, %v1641_v0  ;;  %304 = vst.msk [vmem:[#allocation4 + $0x18] sm:$0xff] %vm300_vm0, %v1641_v0  ;;  %1317 = vmatprep.subr.mxu1 %v1641_v0  ;;  %1319 = vmatprep.mubr.msk.f32.mxu1 %vm1642_vm1, %v1641_v0  ;;  %v1644_v8 = vmov 0   ;;  %s1645_s18 = smov 120   ;;  %s1646_s24 = smov 112   ;;  %vm1116_vm3 = vcmask 130048  }
  0x79   : > { %1313 = vmatpush3.xpose.msk.msra.mxu0 %vm300_vm0, %v306_v1  ;;  %292 = vst.msk [vmem:[#allocation2] sm:$0xff] %vm291_vm2, %v1643_v4  ;;  %293 = vst.msk [vmem:[#allocation2 + $0x8] sm:$0xff] %vm291_vm2, %v1643_v4  ;;  %1434 = vset.pattern.permute.xlu0 %v1644_v8  ;;  %s1647_s7 = smov 104   ;;  %s254_s20 = scalar_lea.vmem [#allocation10], %s1867_s8  ;;  %vm1118_vm4 = vcmask 195584   ;;  %vm1120_vm5 = vcmask 261120  }
  0x7a   : > { %1327 = vmatprep.subr.mxu0 %v1641_v0  ;;  %294 = vst.msk [vmem:[#allocation2 + $0x10] sm:$0xff] %vm291_vm2, %v1643_v4  ;;  %295 = vst.msk [vmem:[#allocation2 + $0x18] sm:$0xff] %vm291_vm2, %v1643_v4  ;;  %1435 = vset.pattern.permute.xlu1 %v1644_v8  ;;  %v307_v13 = vld [vmem:[%s254_s20] sm:$0xff]  ;;  %s1648_s10 = smov 8   ;;  %s1649_s6 = smov 16  }
  0x7b   : > { %296 = vst.msk [vmem:[#allocation3] sm:$0xff] %vm291_vm2, %v1641_v0  ;;  %297 = vst.msk [vmem:[#allocation3 + $0x8] sm:$0xff] %vm291_vm2, %v1641_v0  ;;  %495 = vrot.lane.b32.xlu1 %v306_v1, %s1645_s18  ;;  %1318 = vmatpush3.msra.mxu1 %v307_v13  ;;  %s1650_s9 = smov 24   ;;  %s1293_s22 = sshll.u32 %s1628_s15, 7 }
  0x7c   : > { %1315 = vmatmul.mubr.msk.f32.vlgmr.msra.gmra.mrb[0].mxu0 %vm300_vm0, %v308_v3  ;;  %298 = vst.msk [vmem:[#allocation3 + $0x10] sm:$0xff] %vm291_vm2, %v1641_v0  ;;  %299 = vst.msk [vmem:[#allocation3 + $0x18] sm:$0xff] %vm291_vm2, %v1641_v0  ;;  %1322 = vmatprep.subr.mxu1 %v1641_v0  ;;  %s286_s28 = scalar_lea.vmem [#allocation11], %s1867_s8  ;;  %s1988_s5 = scalar_lea.hbm %s2040_s3, %s1293_s22 }
  0x7d   : > { %1329 = vmatprep.mubr.msk.f32.mxu0 %vm1642_vm1, %v1641_v0  ;;  %s1137_s30 = sshll.u32 %s286_s28, 4  ;;  %s1123_s15 = scalar_lea.sflag [#allocation7], %s1864_s21  ;;  %s1990_s30 = int_to_ptr.vmem [resolvable:$true] %s1137_s30 }
  0x7e   : > { %s1550_s23 = scalar_lea.vmem %s1990_s30, 128  ;;  %p2063_p10 = scmp.ne.s32.totalorder %s2051_s25, 0 }
  0x7f   : > { %493 = vrot.lane.b32.xlu1 %v308_v3, %s1645_s18  ;;  %p1551_p4 = scmp.ne.s32.totalorder %s1990_s30, %s1550_s23  ;;  %s1651_s8 = smov [#allocation11]  }
  0x80   : > { %v1919_v9 = vld [vmem:[#allocation2] sm:$0xff]  ;;  %v572_v35 = vld [vmem:[#allocation2 + $0x8] sm:$0xff]  ;;  %s1554_s26 = sshll.u32 %s1651_s8, 4  ;;  %s1555_s26 = int_to_ptr.vmem [resolvable:$false] %s1554_s26 }
  0x81   : > { %v763_v38 = vld [vmem:[#allocation2 + $0x10] sm:$0xff]  ;;  %v953_v42 = vld [vmem:[#allocation2 + $0x18] sm:$0xff]  ;;  %p1552_p12 = pnand %p1551_p4, %p2063_p10  ;;  %s1556_s16 = scalar_lea.vmem %s1555_s26, 256 }
  0x82   : > { %p1557_p8 = scmp.lt.s32.totalorder %s1990_s30, %s1555_s26  ;;  %p1558_p9 = scmp.lt.s32.totalorder %s1556_s16, %s1550_s23 }
  0x83   : > { %686 = vrot.lane.b32.xlu1 %v306_v1, %s1646_s24  ;;  %p1553_p1 = pneg %p1552_p12 }
  0x84   : > { %p1559_p6 = por %p1558_p9, %p1557_p8 }
  0x86   : > { %p1560_p13 = pnand %p1559_p6, %p1553_p1 }
  0x87   : > { %684 = vrot.lane.b32.xlu1 %v308_v3, %s1646_s24 }
  0x8b   : > { %876 = vrot.lane.b32.xlu1 %v306_v1, %s1647_s7 }
  0x8f   : > { %874 = vrot.lane.b32.xlu1 %v308_v3, %s1647_s7 }
  0xed   : > { %v496_v14 = vpop.permute.xlu1 %495 }
  0xf1   : > { %v494_v17 = vpop.permute.xlu1 %493 }
  0xf5   : > { %v687_v19 = vpop.permute.xlu1 %686 }
  0xf9   : > { %v685_v20 = vpop.permute.xlu1 %684 }
  0xfd   : > { %v877_v22 = vpop.permute.xlu1 %876 }
 0x101   : > { %v875_v23 = vpop.permute.xlu1 %874 }
 0x14f   : > { %v382_v5 = vpop.f32.mrb[0].mxu0 }
 0x150   : > { %v1316_v6 = vpop.f32.mrb[1].mxu0  ;;  %v387_v7 = vsel %vm300_vm0, %v382_v5, -inf }
 0x151   : > { %388 = vmax.xlane.f32.xlu0 %v387_v7 }
 0x1de   : > { %v389_v10 = vpop.xlane.xlu0 %388 }
 0x1df   : > { %v1922_v11 = vmax.f32 %v1919_v9, %v389_v10 }
 0x1e1   : > { %v391_v12 = vsub.f32 %v1919_v9, %v1922_v11  ;;  %492 = vst.msk [vmem:[#allocation2] sm:$0xff] %vm291_vm2, %v1922_v11  ;;  %396 = vperm.xlu0 %1434, %v1922_v11  }
 0x1e3   : > { %v392_v4 = vmul.f32 1.442695, %v391_v12  ;;  %v589_v12 = vld [vmem:[#allocation3 + $0x8] sm:$0xff] }
 0x260   : > { %v397_v15 = vpop.permute.xlu0 %396 }
 0x261   : > { %v399_v16 = vsub.f32 %v382_v5, %v397_v15 }
 0x263   : > { %v400_v18 = vmul.f32 1.442695, %v399_v16 }
 0x265   : > { %1436 = vpow2.f32 %v400_v18 }
 0x26f   : > { %v1437_v21 = vpop.eup %1436 }
 0x270   : > { %1320 = vmatmul.mubr.msk.f32.vlgmr.msra.gmra.mrb[0].mxu1 %vm300_vm0, %v1437_v21  ;;  %v404_v47 = vsel %vm300_vm0, %v1437_v21, 0.0 }
 0x271   : > { %1323 = vmatpush3.xpose.msk.msra.mxu1 %vm300_vm0, %v496_v14  ;;  %1324 = vmatprep.mubr.msk.f32.mxu1 %vm1642_vm1, %v1641_v0 }
 0x272   : > { %1332 = vmatprep.subr.mxu1 %v1641_v0 }
 0x274   : > { %1325 = vmatmul.mubr.msk.f32.vlgmr.msra.gmra.mrb[2].mxu1 %vm300_vm0, %v494_v17 }
 0x275   : > { %1333 = vmatpush3.xpose.msk.msra.mxu1 %vm300_vm0, %v687_v19  ;;  %1334 = vmatprep.mubr.msk.f32.mxu1 %vm1642_vm1, %v1641_v0  ;;  %v780_v19 = vld [vmem:[#allocation3 + $0x10] sm:$0xff] }
 0x276   : > { %1342 = vmatprep.subr.mxu1 %v1641_v0 }
 0x278   : > { %1335 = vmatmul.mubr.msk.f32.vlgmr.msra.gmra.mrb[4].mxu1 %vm300_vm0, %v685_v20 }
 0x279   : > { %1343 = vmatpush3.xpose.msk.msra.mxu1 %vm300_vm0, %v877_v22  ;;  %1344 = vmatprep.mubr.msk.f32.mxu1 %vm1642_vm1, %v1641_v0 }
 0x27c   : > { %1345 = vmatmul.mubr.msk.f32.vlgmr.msra.gmra.mrb[6].mxu1 %vm300_vm0, %v875_v23  ;;  %v970_v23 = vld [vmem:[#allocation3 + $0x18] sm:$0xff] }
 0x343   : > { %v1946_v24 = vpop.f32.mrb[0].mxu1 }
 0x344   : > { %v1321_v25 = vpop.f32.mrb[1].mxu1 }
 0x347   : > { %v567_v26 = vpop.f32.mrb[2].mxu1 }
 0x348   : > { %v1326_v27 = vpop.f32.mrb[3].mxu1  ;;  %v573_v28 = vsel %vm300_vm0, %v567_v26, -inf }
 0x349   : > { %574 = vmax.xlane.f32.xlu1 %v573_v28 }
 0x34b   : > { %v758_v29 = vpop.f32.mrb[4].mxu1 }
 0x34c   : > { %v1336_v30 = vpop.f32.mrb[5].mxu1  ;;  %v764_v31 = vsel %vm300_vm0, %v758_v29, -inf }
 0x34d   : > { %765 = vmax.xlane.f32.xlu0 %v764_v31 }
 0x34f   : > { %v948_v32 = vpop.f32.mrb[6].mxu1 }
 0x350   : > { %v1346_v33 = vpop.f32.mrb[7].mxu1  ;;  %v954_v34 = vsel %vm300_vm0, %v948_v32, -inf }
 0x351   : > { %955 = vmax.xlane.f32.xlu1 %v954_v34 }
 0x3d6   : > { %v575_v36 = vpop.xlane.xlu1 %574 }
 0x3d7   : > { %v576_v37 = vmax.f32 %v572_v35, %v575_v36 }
 0x3d9   : > { %v577_v39 = vsub.f32 %v572_v35, %v576_v37  ;;  %683 = vst.msk [vmem:[#allocation2 + $0x8] sm:$0xff] %vm291_vm2, %v576_v37  ;;  %582 = vperm.xlu1 %1435, %v576_v37  }
 0x3da   : > { %v766_v40 = vpop.xlane.xlu0 %765 }
 0x3db   : > { %v767_v41 = vmax.f32 %v763_v38, %v766_v40  ;;  %v578_v3 = vmul.f32 1.442695, %v577_v39  ;;  %v597_v40 = vld [vmem:[#allocation4 + $0x8] sm:$0xff] }
 0x3dd   : > { %v768_v43 = vsub.f32 %v763_v38, %v767_v41  ;;  %873 = vst.msk [vmem:[#allocation2 + $0x10] sm:$0xff] %vm291_vm2, %v767_v41  ;;  %773 = vperm.xlu0 %1434, %v767_v41  }
 0x3de   : > { %v956_v44 = vpop.xlane.xlu1 %955 }
 0x3df   : > { %v957_v45 = vmax.f32 %v953_v42, %v956_v44  ;;  %v769_v5 = vmul.f32 1.442695, %v768_v43 }
 0x3e1   : > { %v958_v46 = vsub.f32 %v953_v42, %v957_v45  ;;  %1063 = vst.msk [vmem:[#allocation2 + $0x18] sm:$0xff] %vm291_vm2, %v957_v45  ;;  %963 = vperm.xlu1 %1435, %v957_v45   ;;  %v788_v42 = vld [vmem:[#allocation4 + $0x10] sm:$0xff] }
 0x3e3   : > { %v959_v6 = vmul.f32 1.442695, %v958_v46 }
 0x3e5   : > { %605 = vrot.lane.b32.xlu1 %v307_v13, %s1645_s18 }
 0x3e9   : > { %795 = vrot.lane.b32.xlu1 %v307_v13, %s1646_s24 }
 0x3ed   : > { %985 = vrot.lane.b32.xlu1 %v307_v13, %s1647_s7  ;;  %v402_v13 = vld [vmem:[#allocation3] sm:$0xff] }
 0x411   : > { %405 = vadd.xlane.f32.xlu1 %v404_v47  ;;  %v978_v47 = vld [vmem:[#allocation4 + $0x18] sm:$0xff] }
 0x458   : > { %v583_v48 = vpop.permute.xlu1 %582 }
 0x459   : > { %v585_v49 = vsub.f32 %v567_v26, %v583_v48 }
 0x45b   : > { %v586_v50 = vmul.f32 1.442695, %v585_v49 }
 0x45c   : > { %v774_v51 = vpop.permute.xlu0 %773 }
 0x45d   : > { %1438 = vpow2.f32 %v586_v50  ;;  %v776_v52 = vsub.f32 %v758_v29, %v774_v51  ;;  %v410_v29 = vld [vmem:[#allocation4] sm:$0xff] }
 0x45f   : > { %v777_v53 = vmul.f32 1.442695, %v776_v52 }
 0x460   : > { %v964_v54 = vpop.permute.xlu1 %963 }
 0x461   : > { %1440 = vpow2.f32 %v777_v53  ;;  %v966_v55 = vsub.f32 %v948_v32, %v964_v54 }
 0x463   : > { %v967_v56 = vmul.f32 1.442695, %v966_v55 }
 0x464   : > { %v606_v57 = vpop.permute.xlu1 %605 }
 0x465   : > { %1442 = vpow2.f32 %v967_v56  ;;  %1328 = vmatpush3.msra.mxu0 %v606_v57 }
 0x466   : > { %1337 = vmatprep.subr.mxu0 %v1641_v0  ;;  %1444 = vpow2.f32 %v578_v3 }
 0x467   : > { %v1439_v58 = vpop.eup %1438  ;;  %1446 = vpow2.f32 %v392_v4 }
 0x468   : > { %1330 = vmatmul.mubr.msk.f32.vlgmr.msra.gmra.mrb[2].mxu0 %vm300_vm0, %v1439_v58  ;;  %v591_v59 = vsel %vm300_vm0, %v1439_v58, 0.0  ;;  %v796_v60 = vpop.permute.xlu1 %795  ;;  %1448 = vpow2.f32 %v769_v5 }
 0x469   : > { %592 = vadd.xlane.f32.xlu0 %v591_v59  ;;  %1338 = vmatpush3.msra.mxu0 %v796_v60  ;;  %1450 = vpow2.f32 %v959_v6 }
 0x46a   : > { %1339 = vmatprep.mubr.msk.f32.mxu0 %vm1642_vm1, %v1641_v0  ;;  %1347 = vmatprep.subr.mxu0 %v1641_v0 }
 0x46b   : > { %v1441_v61 = vpop.eup %1440 }
 0x46c   : > { %1340 = vmatmul.mubr.msk.f32.vlgmr.msra.gmra.mrb[4].mxu0 %vm300_vm0, %v1441_v61  ;;  %v782_v62 = vsel %vm300_vm0, %v1441_v61, 0.0  ;;  %v986_v63 = vpop.permute.xlu1 %985 }
 0x46d   : > { %783 = vadd.xlane.f32.xlu0 %v782_v62  ;;  %1348 = vmatpush3.msra.mxu0 %v986_v63 }
 0x46e   : > { %1349 = vmatprep.mubr.msk.f32.mxu0 %vm1642_vm1, %v1641_v0 }
 0x46f   : > { %v1443_v1 = vpop.eup %1442 }
 0x470   : > { %1350 = vmatmul.mubr.msk.f32.vlgmr.msra.gmra.mrb[6].mxu0 %vm300_vm0, %v1443_v1  ;;  %v972_v2 = vsel %vm300_vm0, %v1443_v1, 0.0  ;;  %v1445_v7 = vpop.eup %1444 }
 0x471   : > { %973 = vadd.xlane.f32.xlu1 %v972_v2  ;;  %v1447_v8 = vpop.eup %1446  ;;  %v590_v17 = vmul.f32 %v1445_v7, %v589_v12 }
 0x472   : > { %v1449_v0 = vpop.eup %1448  ;;  %v403_v14 = vmul.f32 %v1447_v8, %v402_v13 }
 0x473   : > { %v1451_v10 = vpop.eup %1450  ;;  %v781_v21 = vmul.f32 %v1449_v0, %v780_v19 }
 0x474   : > { %v971_v26 = vmul.f32 %v1451_v10, %v970_v23 }
 0x482   : > { %600 = vperm.xlu1 %1435, %v1445_v7  }
 0x483   : > { %413 = vperm.xlu0 %1434, %v1447_v8  }
 0x486   : > { %791 = vperm.xlu1 %1435, %v1449_v0  }
 0x487   : > { %981 = vperm.xlu0 %1434, %v1451_v10  }
 0x49e   : > { %v406_v15 = vpop.xlane.xlu1 %405 }
 0x49f   : > { %v407_v16 = vadd.f32 %v406_v15, %v403_v14 }
 0x4a1   : > { %409 = vst.msk [vmem:[#allocation3] sm:$0xff] %vm291_vm2, %v407_v16 }
 0x4a8   : > { %v1067_v9 = vld [vmem:[#allocation3] sm:$0xff] }
 0x4a9   : > { %1452 = vrcp.f32 %v1067_v9 }
 0x4b3   : > { %v1453_v11 = vpop.eup %1452 }
 0x4b4   : > { %1072 = vperm.xlu1 %1435, %v1453_v11  }
 0x4f6   : > { %v593_v18 = vpop.xlane.xlu0 %592 }
 0x4f7   : > { %v594_v20 = vadd.f32 %v593_v18, %v590_v17 }
 0x4f9   : > { %595 = vst.msk [vmem:[#allocation3 + $0x8] sm:$0xff] %vm291_vm2, %v594_v20 }
 0x4fa   : > { %v784_v22 = vpop.xlane.xlu0 %783 }
 0x4fb   : > { %v785_v25 = vadd.f32 %v784_v22, %v781_v21 }
 0x4fd   : > { %786 = vst.msk [vmem:[#allocation3 + $0x10] sm:$0xff] %vm291_vm2, %v785_v25 }
 0x4fe   : > { %v974_v27 = vpop.xlane.xlu1 %973 }
 0x4ff   : > { %v975_v28 = vadd.f32 %v974_v27, %v971_v26 }
 0x500   : > { %v1076_v30 = vld [vmem:[#allocation3 + $0x8] sm:$0xff] }
 0x501   : > { %976 = vst.msk [vmem:[#allocation3 + $0x18] sm:$0xff] %vm291_vm2, %v975_v28  ;;  %1454 = vrcp.f32 %v1076_v30 }
 0x502   : > { %v414_v31 = vpop.permute.xlu0 %413  ;;  %v601_v39 = vpop.permute.xlu1 %600 }
 0x503   : > { %v416_v32 = vmul.f32 %v414_v31, %v410_v29  ;;  %v603_v41 = vmul.f32 %v601_v39, %v597_v40 }
 0x504   : > { %v1085_v33 = vld [vmem:[#allocation3 + $0x10] sm:$0xff] }
 0x505   : > { %v490_v34 = vadd.f32 %v1946_v24, %v416_v32  ;;  %1456 = vrcp.f32 %v1085_v33 }
 0x506   : > { %v792_v43 = vpop.permute.xlu1 %791  ;;  %v982_v48 = vpop.permute.xlu0 %981 }
 0x507   : > { %491 = vst.msk [vmem:[#allocation4] sm:$0xff] %vm300_vm0, %v490_v34  ;;  %v794_v24 = vmul.f32 %v792_v43, %v788_v42  ;;  %v984_v52 = vmul.f32 %v982_v48, %v978_v47 }
 0x508   : > { %v1094_v35 = vld [vmem:[#allocation3 + $0x18] sm:$0xff] }
 0x509   : > { %1458 = vrcp.f32 %v1094_v35 }
 0x50b   : > { %v1455_v36 = vpop.eup %1454 }
 0x50c   : > { %1081 = vperm.xlu0 %1434, %v1455_v36  }
 0x50e   : > { %v1069_v3 = vld [vmem:[#allocation4] sm:$0xff] }
 0x50f   : > { %v1457_v37 = vpop.eup %1456 }
 0x510   : > { %1090 = vperm.xlu1 %1435, %v1457_v37  }
 0x513   : > { %v1459_v38 = vpop.eup %1458 }
 0x514   : > { %1099 = vperm.xlu0 %1434, %v1459_v38  }
 0x533   : > { %v1073_v56 = vpop.permute.xlu1 %1072 }
 0x534   : > { %v1075_v5 = vmul.f32 %v1073_v56, %v1069_v3 }
 0x53b   : > { %v677_v44 = vpop.f32.mrb[2].mxu0 }
 0x53c   : > { %v681_v45 = vadd.f32 %v677_v44, %v603_v41  ;;  %v1331_v46 = vpop.f32.mrb[3].mxu0 }
 0x53e   : > { %682 = vst.msk [vmem:[#allocation4 + $0x8] sm:$0xff] %vm300_vm0, %v681_v45 }
 0x53f   : > { %v867_v49 = vpop.f32.mrb[4].mxu0 }
 0x540   : > { %v871_v50 = vadd.f32 %v867_v49, %v794_v24  ;;  %v1341_v51 = vpop.f32.mrb[5].mxu0 }
 0x542   : > { %872 = vst.msk [vmem:[#allocation4 + $0x10] sm:$0xff] %vm300_vm0, %v871_v50 }
 0x543   : > { %v1057_v53 = vpop.f32.mrb[6].mxu0 }
 0x544   : > { %v1061_v54 = vadd.f32 %v1057_v53, %v984_v52  ;;  %v1351_v55 = vpop.f32.mrb[7].mxu0 }
 0x545   : > { %v1078_v57 = vld [vmem:[#allocation4 + $0x8] sm:$0xff] }
 0x546   : > { %1062 = vst.msk [vmem:[#allocation4 + $0x18] sm:$0xff] %vm300_vm0, %v1061_v54 }
 0x549   : > { %v1087_v60 = vld [vmem:[#allocation4 + $0x10] sm:$0xff] }
 0x54d   : > { %v1096_v63 = vld [vmem:[#allocation4 + $0x18] sm:$0xff] }
 0x58b   : > { %v1082_v58 = vpop.permute.xlu0 %1081 }
 0x58c   : > { %v1084_v59 = vmul.f32 %v1082_v58, %v1078_v57 }
 0x58e   : > { %1104 = vrot.lane.b32.xlu1 %v1084_v59, %s1648_s10 }
 0x58f   : > { %v1091_v61 = vpop.permute.xlu1 %1090 }
 0x590   : > { %v1093_v62 = vmul.f32 %v1091_v61, %v1087_v60 }
 0x592   : > { %1108 = vrot.lane.b32.xlu0 %v1093_v62, %s1649_s6 }
 0x593   : > { %v1100_v1 = vpop.permute.xlu0 %1099 }
 0x594   : > { %v1102_v2 = vmul.f32 %v1100_v1, %v1096_v63 }
 0x596   : > { %1112 = vrot.lane.b32.xlu1 %v1102_v2, %s1650_s9 }
 0x600   : > { %v1105_v4 = vpop.permute.xlu1 %1104 }
 0x601   : > { %v1115_v7 = vsel %vm300_vm0, %v1075_v5, %v1105_v4 }
 0x604   : > { %v1109_v6 = vpop.permute.xlu0 %1108 }
 0x605   : > { %v1117_v8 = vsel %vm1116_vm3, %v1115_v7, %v1109_v6 }
 0x608   : > { %v1113_v0 = vpop.permute.xlu1 %1112 }
 0x609   : > { %v1119_v10 = vsel %vm1118_vm4, %v1117_v8, %v1113_v0 }
 0x60a   : > { %1121 = vst.msk [vmem:[%s286_s28] sm:$0xff] %vm1120_vm5, %v1119_v10 }
 0x60b   : > { %1563 = shalt.err (!%p1560_p13)
}
 0x60c   : > { %s1564_s21 = scalar_lea.hbm %s1988_s5, 128  ;;  %s1568_s19 = scalar_lea.hbm %s2040_s3, 256 }
 0x60d   : > { %p1565_p11 = scmp.ne.s32.totalorder %s1988_s5, %s1564_s21  ;;  %p1569_p7 = scmp.lt.u32.totalorder %s1988_s5, %s2040_s3 }
 0x60e   : > { %p1570_p3 = scmp.lt.u32.totalorder %s1568_s19, %s1564_s21  ;;  %p1572_p4 = scmp.lt.u32.totalorder %s1564_s21, %s1988_s5 }
 0x60f   : > { %p1566_p2 = pnand %p1565_p11, %p2063_p10 }
 0x610   : > { %p1571_p0 = por %p1570_p3, %p1569_p7 }
 0x611   : > { %p1567_p5 = pneg %p1566_p2 }
 0x612   : > { %p1573_p12 = por %p1572_p4, %p1571_p0 }
 0x614   : > { %p1574_p1 = pnand %p1573_p12, %p1567_p5 }
 0x616   : > { %1577 = shalt.err (!%p1574_p1)
}
 0x617   : > { %1358 = dma.vmem_to_hbm [thread:$0]  (%p2063_p10), %s1990_s30, 128, %s1988_s5, %s1123_s15  }
 0x618 PF: > { %s1149_s7 = sand.u32 1, %s1616_s12   ;;  %p2064_p8 = scmp.ne.s32.totalorder %s2053_s27, 0 }
 0x619   : > { %p2065_p9 = scmp.ge.s32.totalorder %s1636_s17, 2  ;;  %s1150_s20 = scalar_lea.sflag [#allocation7], %s1149_s7 }
 0x61b   : > { %p1371_p6 = pnand %p2065_p9, %p2064_p8 }
 0x61d   : > { %1611 = dma.done.wait (!%p1371_p6), %s1150_s20, 128  }
 0x61e   : > { %1613 = vsyncadd (!%p1371_p6), %s1150_s20, 4294967168  ;;  %s22_s17 = sadd.s32 1, %s1636_s17   ;;  %s2066_s25 = sld [smem:[#allocation17_spill]] }
 0x61f   : > { %p19_p13 = scmp.ge.s32.totalorder %s22_s17, 4   ;;  %s2067_s15 = sld [smem:[#allocation15_spill]] }
 0x620   : > { %s2068_s16 = sld [smem:[#allocation16_spill]]  ;;  %s2069_s12 = smov %s1620_s13 }
 0x621   : > { %s2070_s13 = smov %s1624_s14  ;;  %21 = sbr.rel (!%p19_p13) target bundleno = 10 (0xa), region = 118 }
 0x624   : > { %s2071_s14 = smov %s2066_s25 }
 0x628   :  { %1155 = vsyncpa [#allocation6], 1 }
 0x629   :  { %1157 = vsyncpa [#allocation6 + $0x1], 1 }
 0x62a   :  { %1158 = vsyncpa [#allocation9], 1 }
 0x62b   :  { %1160 = vsyncpa [#allocation9 + $0x1], 1 }
 0x62c   :  { %1161 = vsyncpa [#allocation7], 1 }
 0x62d   :  { %1163 = vsyncpa [#allocation7 + $0x1], 1 }

</bundles_post_ra>
